<compile_context>
chip_gen: v7x
topology: tpu7x:2x2x1
jax: 0.10.0
libtpu: 0.0.40
codegen_flags: <defaults>
</compile_context>

<pallas_src>
import functools
import math

import jax
import jax.numpy as jnp
from jax.experimental import pallas as pl
from jax.experimental.pallas import tpu as pltpu

SQRT2 = math.sqrt(2.0)
_LANE = 128


def _scaled_leaky_relu_kernel(x_ref, o_ref, *, negative_slope):
    x = x_ref[...]
    # Select between two constant scales, then a single vmul per vreg.
    pos = jnp.asarray(SQRT2, dtype=x.dtype)
    neg = jnp.asarray(negative_slope * SQRT2, dtype=x.dtype)
    o_ref[...] = (x * jnp.where(x >= 0, pos, neg)).astype(o_ref.dtype)


def _round_up(v, m):
    return -(-v // m) * m


@functools.lru_cache(maxsize=None)
def _vmem_budget():
    """(vmem_limit_bytes, per-buffer block-size target) sized per TPU generation."""
    cap = 64 << 20  # conservative fallback == v7x per-TC physical VMEM
    try:
        info = pltpu.get_tpu_info()
        cap = int(getattr(info, "vmem_capacity_bytes", cap) or cap)
    except Exception:
        pass  # not on TPU / older API -> keep conservative default
    vmem_limit = min(64 << 20, (cap * 3) // 4)     # 48 MiB on v7x, 64 MiB on v5e/v6e
    target_bytes = min(8 << 20, vmem_limit // 6)   # 4 pipelined buffers + headroom
    return vmem_limit, target_bytes


def _choose_tiles(rows, cols, itemsize, target_bytes):
    """Legal (sublane/lane-aligned or full-dim) tiles targeting ~target_bytes/block."""
    sub = max(8, 32 // itemsize)  # packed sublane multiple: 8 f32 / 16 bf16 / 32 int8
    # Trailing dim: keep it full (always a legal block dim) unless even a
    # minimal-row block would blow the budget; then tile it in lane multiples.
    if cols * sub * itemsize <= target_bytes:
        tile_cols = cols
    else:
        tile_cols = max(_LANE, (target_bytes // (sub * itemsize)) // _LANE * _LANE)
        if tile_cols >= cols:
            tile_cols = cols
    # Rows fill the remaining budget, rounded to the sublane multiple.
    tile_rows = max(sub, (target_bytes // max(tile_cols * itemsize, 1)) // sub * sub)
    if tile_rows >= rows:
        tile_rows = rows
    # v7x: best-effort even total program count so the "parallel" grid shards
    # evenly across 2 TensorCores (harmless on single-TC v5e/v6e).
    grid_c = pl.cdiv(cols, tile_cols)
    if tile_rows < rows:
        grid_r = pl.cdiv(rows, tile_rows)
        if (grid_r * grid_c) % 2 == 1:
            alt = _round_up(-(-rows // (grid_r + 1)), sub)
            if 0 < alt < rows and (pl.cdiv(rows, alt) * grid_c) % 2 == 0:
                tile_rows = alt
    return tile_rows, tile_cols


def scaled_leaky_relu(x, negative_slope=0.2):
    """Elementwise leaky_relu(x, negative_slope) * sqrt(2) via Pallas on TPU."""
    if x.size == 0:
        return x

    orig_shape = x.shape
    dtype = x.dtype
    itemsize = jnp.dtype(dtype).itemsize

    # Collapse only LEADING dims -> (prod(leading), last_dim). For ndim >= 2 the
    # physical (8,128)-tiled layout is unchanged, so this is a bitcast, not an
    # HBM copy (and the inverse reshape on the output likewise).
    if x.ndim >= 2:
        rows = math.prod(orig_shape[:-1])
        cols = orig_shape[-1]
    else:
        rows, cols = 1, x.size
    x2d = x.reshape(rows, cols)

    vmem_limit, target_bytes = _vmem_budget()
    tile_rows, tile_cols = _choose_tiles(rows, cols, itemsize, target_bytes)
    grid = (pl.cdiv(rows, tile_rows), pl.cdiv(cols, tile_cols))

    n = x.size
    out2d = pl.pallas_call(
        functools.partial(
            _scaled_leaky_relu_kernel, negative_slope=float(negative_slope)
        ),
        out_shape=jax.ShapeDtypeStruct((rows, cols), dtype),
        grid=grid,
        in_specs=[pl.BlockSpec((tile_rows, tile_cols), lambda i, j: (i, j))],
        out_specs=pl.BlockSpec((tile_rows, tile_cols), lambda i, j: (i, j)),
        compiler_params=pltpu.CompilerParams(
            dimension_semantics=("parallel", "parallel"),
            vmem_limit_bytes=vmem_limit,
        ),
        cost_estimate=pl.CostEstimate(
            flops=2 * n, transcendentals=0, bytes_accessed=2 * n * itemsize
        ),
    )(x2d)

    return out2d.reshape(orig_shape)


def _reference(x, negative_slope=0.2):
    return jnp.where(x >= 0, x, x * negative_slope) * SQRT2


if __name__ == "__main__":
    key = jax.random.PRNGKey(0)
    # NCHW, matching the PyTorch conv-activation convention of the module.
    x = jax.random.normal(key, (2, 4, 16, 16), dtype=jnp.float32)

    out = jax.block_until_ready(scaled_leaky_relu(x, negative_slope=0.2))

    ref = _reference(x, negative_slope=0.2)
    assert out.shape == x.shape and out.dtype == x.dtype
    assert jnp.allclose(out, ref, atol=1e-6, rtol=1e-6)

    print("KERNEL_OK")
</pallas_src>

<mosaic_0001>
module attributes {stable_mosaic.version = 11 : i64} {
  func.func @_scaled_leaky_relu_kernel(%arg0: i32, %arg1: i32, %arg2: memref<128x16xf32, #tpu.memory_space<vmem>>, %arg3: memref<128x16xf32, #tpu.memory_space<vmem>>) attributes {dimension_semantics = [#tpu.dimension_semantics<parallel>, #tpu.dimension_semantics<parallel>], iteration_bounds = array<i64: 1, 1>, scalar_prefetch = 0 : i64, scratch_operands = 0 : i64, tpu.core_type = #tpu.core_type<tc>, window_params = [{transform_indices = @transform_0, window_bounds = array<i64: 128, 16>}, {transform_indices = @transform_1, window_bounds = array<i64: 128, 16>}]} {
    %c0 = arith.constant 0 : index
    %c0_0 = arith.constant 0 : index
    %0 = vector.load %arg2[%c0, %c0_0] : memref<128x16xf32, #tpu.memory_space<vmem>>, vector<128x16xf32>
    %cst = arith.constant 0.000000e+00 : f32
    %1 = vector.broadcast %cst : f32 to vector<128x16xf32>
    %2 = arith.cmpf oge, %0, %1 : vector<128x16xf32>
    %cst_1 = arith.constant 1.41421354 : f32
    %cst_2 = arith.constant 0.282842726 : f32
    %3 = vector.broadcast %cst_1 : f32 to vector<128x16xf32>
    %4 = vector.broadcast %cst_2 : f32 to vector<128x16xf32>
    %5 = arith.select %2, %3, %4 : vector<128x16xi1>, vector<128x16xf32>
    %6 = arith.mulf %0, %5 : vector<128x16xf32>
    %c0_3 = arith.constant 0 : index
    %c0_4 = arith.constant 0 : index
    %7 = vector.load %arg3[%c0_3, %c0_4] : memref<128x16xf32, #tpu.memory_space<vmem>>, vector<128x16xf32>
    tpu.vector_store %arg3[%c0_3, %c0_4], %6 {strides = array<i32>} : memref<128x16xf32, #tpu.memory_space<vmem>>, vector<128x16xf32>,
    return
  }
  func.func @transform_0(%arg0: i32, %arg1: i32) -> (i32, i32) {
    %c0_i32 = arith.constant 0 : i32
    return %arg0, %arg1 : i32, i32
  }
  func.func @transform_1(%arg0: i32, %arg1: i32) -> (i32, i32) {
    %c0_i32 = arith.constant 0 : i32
    return %arg0, %arg1 : i32, i32
  }
}

</mosaic_0001>

<bundles_post_ra>
// kernel: tpu_custom_call.1
= control target key start
LH: loop header
LB: loop body
LE: loop exit
PB: predicated region body
PF: predicated region fallthrough
CT: control target
= control target key end

     0   :  { %vm72_vm0 = vcmask 130048   ;;  %v94_v6 = vmov 0.28284273   ;;  %s233_s0 = inlined_call_operand.vmem [shape: f32[128,16], index: 0, kind: input, shape index: {}]   ;;  %s234_s1 = inlined_call_operand.vmem [shape: f32[128,16], index: 1, kind: output, shape index: {}]  }
   0x1   :  { %v8_v0 = vld [vmem:[%s233_s0] sm:$0xff]  ;;  %v9_v1 = vld [vmem:[%s233_s0 + $0x8] sm:$0xff]  ;;  %v10_v2 = vld [vmem:[%s233_s0 + $0x10] sm:$0xff] }
   0x2   :  { %vm24_vm1 = vcmp.ge.f32.partialorder %v8_v0, 0.0  ;;  %vm25_vm2 = vcmp.ge.f32.partialorder %v9_v1, 0.0  ;;  %vm26_vm3 = vcmp.ge.f32.partialorder %v10_v2, 0.0  ;;  %v11_v3 = vld [vmem:[%s233_s0 + $0x18] sm:$0xff]  ;;  %v12_v4 = vld [vmem:[%s233_s0 + $0x20] sm:$0xff]  ;;  %v13_v5 = vld [vmem:[%s233_s0 + $0x28] sm:$0xff] }
   0x3   :  { %v40_v7 = vsel %vm24_vm1, 1.4142135, %v94_v6  ;;  %v41_v8 = vsel %vm25_vm2, 1.4142135, %v94_v6  ;;  %v42_v9 = vsel %vm26_vm3, 1.4142135, %v94_v6 }
   0x4   :  { %v56_v10 = vmul.f32 %v40_v7, %v8_v0  ;;  %v57_v11 = vmul.f32 %v41_v8, %v9_v1  ;;  %v58_v12 = vmul.f32 %v42_v9, %v10_v2  ;;  %vm27_vm4 = vcmp.ge.f32.partialorder %v11_v3, 0.0  ;;  %v14_v13 = vld [vmem:[%s233_s0 + $0x30] sm:$0xff]  ;;  %v15_v14 = vld [vmem:[%s233_s0 + $0x38] sm:$0xff]  ;;  %v16_v15 = vld [vmem:[%s233_s0 + $0x40] sm:$0xff] }
   0x5   :  { %v43_v16 = vsel %vm27_vm4, 1.4142135, %v94_v6  ;;  %vm28_vm5 = vcmp.ge.f32.partialorder %v12_v4, 0.0  ;;  %vm29_vm6 = vcmp.ge.f32.partialorder %v13_v5, 0.0  ;;  %vm30_vm7 = vcmp.ge.f32.partialorder %v14_v13, 0.0  ;;  %v17_v17 = vld [vmem:[%s233_s0 + $0x48] sm:$0xff] }
   0x6   :  { %73 = vst.msk [vmem:[%s234_s1] sm:$0xff] %vm72_vm0, %v56_v10  ;;  %74 = vst.msk [vmem:[%s234_s1 + $0x8] sm:$0xff] %vm72_vm0, %v57_v11  ;;  %v59_v18 = vmul.f32 %v43_v16, %v11_v3  ;;  %v44_v19 = vsel %vm28_vm5, 1.4142135, %v94_v6  ;;  %v45_v20 = vsel %vm29_vm6, 1.4142135, %v94_v6 }
   0x7   :  { %75 = vst.msk [vmem:[%s234_s1 + $0x10] sm:$0xff] %vm72_vm0, %v58_v12  ;;  %v46_v21 = vsel %vm30_vm7, 1.4142135, %v94_v6  ;;  %v60_v22 = vmul.f32 %v44_v19, %v12_v4  ;;  %v61_v23 = vmul.f32 %v45_v20, %v13_v5  ;;  %vm31_vm8 = vcmp.ge.f32.partialorder %v15_v14, 0.0  ;;  %v18_v25 = vld [vmem:[%s233_s0 + $0x50] sm:$0xff]  ;;  %v19_v26 = vld [vmem:[%s233_s0 + $0x58] sm:$0xff] }
   0x8   :  { %v62_v24 = vmul.f32 %v46_v21, %v14_v13  ;;  %v20_v27 = vld [vmem:[%s233_s0 + $0x60] sm:$0xff]  ;;  %76 = vst.msk [vmem:[%s234_s1 + $0x18] sm:$0xff] %vm72_vm0, %v59_v18  ;;  %v47_v28 = vsel %vm31_vm8, 1.4142135, %v94_v6  ;;  %vm32_vm9 = vcmp.ge.f32.partialorder %v16_v15, 0.0  ;;  %vm33_vm10 = vcmp.ge.f32.partialorder %v17_v17, 0.0 }
   0x9   :  { %vm34_vm11 = vcmp.ge.f32.partialorder %v18_v25, 0.0  ;;  %v21_v29 = vld [vmem:[%s233_s0 + $0x68] sm:$0xff]  ;;  %77 = vst.msk [vmem:[%s234_s1 + $0x20] sm:$0xff] %vm72_vm0, %v60_v22  ;;  %78 = vst.msk [vmem:[%s234_s1 + $0x28] sm:$0xff] %vm72_vm0, %v61_v23  ;;  %v63_v30 = vmul.f32 %v47_v28, %v15_v14  ;;  %v48_v31 = vsel %vm32_vm9, 1.4142135, %v94_v6 }
   0xa   :  { %79 = vst.msk [vmem:[%s234_s1 + $0x30] sm:$0xff] %vm72_vm0, %v62_v24  ;;  %v49_v32 = vsel %vm33_vm10, 1.4142135, %v94_v6  ;;  %v50_v33 = vsel %vm34_vm11, 1.4142135, %v94_v6  ;;  %v64_v34 = vmul.f32 %v48_v31, %v16_v15  ;;  %vm35_vm12 = vcmp.ge.f32.partialorder %v19_v26, 0.0 }
   0xb   :  { %v65_v35 = vmul.f32 %v49_v32, %v17_v17  ;;  %v66_v36 = vmul.f32 %v50_v33, %v18_v25  ;;  %v22_v37 = vld [vmem:[%s233_s0 + $0x70] sm:$0xff]  ;;  %v23_v38 = vld [vmem:[%s233_s0 + $0x78] sm:$0xff]  ;;  %80 = vst.msk [vmem:[%s234_s1 + $0x38] sm:$0xff] %vm72_vm0, %v63_v30  ;;  %v51_v39 = vsel %vm35_vm12, 1.4142135, %v94_v6  ;;  %vm36_vm13 = vcmp.ge.f32.partialorder %v20_v27, 0.0 }
   0xc   :  { %vm37_vm14 = vcmp.ge.f32.partialorder %v21_v29, 0.0  ;;  %vm38_vm15 = vcmp.ge.f32.partialorder %v22_v37, 0.0  ;;  %81 = vst.msk [vmem:[%s234_s1 + $0x40] sm:$0xff] %vm72_vm0, %v64_v34  ;;  %v67_v40 = vmul.f32 %v51_v39, %v19_v26  ;;  %v52_v41 = vsel %vm36_vm13, 1.4142135, %v94_v6 }
   0xd   :  { %82 = vst.msk [vmem:[%s234_s1 + $0x48] sm:$0xff] %vm72_vm0, %v65_v35  ;;  %83 = vst.msk [vmem:[%s234_s1 + $0x50] sm:$0xff] %vm72_vm0, %v66_v36  ;;  %v53_v42 = vsel %vm37_vm14, 1.4142135, %v94_v6  ;;  %v54_v43 = vsel %vm38_vm15, 1.4142135, %v94_v6  ;;  %v68_v44 = vmul.f32 %v52_v41, %v20_v27 }
   0xe   :  { %v69_v45 = vmul.f32 %v53_v42, %v21_v29  ;;  %v70_v46 = vmul.f32 %v54_v43, %v22_v37  ;;  %vm39_vm1 = vcmp.ge.f32.partialorder %v23_v38, 0.0  ;;  %84 = vst.msk [vmem:[%s234_s1 + $0x58] sm:$0xff] %vm72_vm0, %v67_v40 }
   0xf   :  { %v55_v47 = vsel %vm39_vm1, 1.4142135, %v94_v6  ;;  %85 = vst.msk [vmem:[%s234_s1 + $0x60] sm:$0xff] %vm72_vm0, %v68_v44 }
  0x10   :  { %86 = vst.msk [vmem:[%s234_s1 + $0x68] sm:$0xff] %vm72_vm0, %v69_v45  ;;  %87 = vst.msk [vmem:[%s234_s1 + $0x70] sm:$0xff] %vm72_vm0, %v70_v46  ;;  %v71_v48 = vmul.f32 %v55_v47, %v23_v38 }
  0x12   :  { %88 = vst.msk [vmem:[%s234_s1 + $0x78] sm:$0xff] %vm72_vm0, %v71_v48 }

</bundles_post_ra>
